<compile_context>
chip_gen: v7x
topology: tpu7x:2x2x1
jax: 0.10.0
libtpu: 0.0.40
codegen_flags: <defaults>
</compile_context>

<pallas_src>
import jax
import jax.numpy as jnp
import numpy as np
from jax.experimental import pallas as pl
from jax.experimental.pallas import tpu as pltpu

# ---- model hyper-params (small, consistent with the module) ----------------
B = 2            # batch
N = 8            # sequence length
D_MODEL = 32     # d_model
NHEAD = 4        # heads
DIM_HEAD = D_MODEL // NHEAD
DIM_FF = 64      # dim_feedforward (scaled down from 2048)
LN_EPS = 1e-5
ATTN_EPS = 1e-8  # eps used by memory_efficient_attention denominator
NEG_INF = -1e30

BN = B * N                        # total tokens
HB = NHEAD * BN                   # head-stacked rows

# power-of-two shifts used to build masks without integer division
assert (BN & (BN - 1)) == 0 and (N & (N - 1)) == 0 and (DIM_HEAD & (DIM_HEAD - 1)) == 0
ROW_HEAD_SHIFT = BN.bit_length() - 1        # row // BN        -> head index
LANE_HEAD_SHIFT = DIM_HEAD.bit_length() - 1 # lane // DIM_HEAD -> head index
SEQ_SHIFT = N.bit_length() - 1              # token // N       -> batch index


# ---- single-invocation fused transformer-block kernel -----------------------
def transformer_kernel(x_ref, wqkv_ref, wo_ref, w1_ref, w2_ref, vec_ref, out_ref):
    x = x_ref[...]                                             # (BN, D)

    # --- fused QKV projection (scale folded into q columns in the wrapper) --
    qkv = jnp.dot(x, wqkv_ref[...], preferred_element_type=jnp.float32)  # (BN, 3D)
    q = qkv[:, :D_MODEL]
    k = qkv[:, D_MODEL:2 * D_MODEL]
    v = qkv[:, 2 * D_MODEL:]

    # --- head-batched attention: heads stacked along sublanes ---------------
    # q_stack row h*BN + i carries q[i] restricted to head h's lanes.
    row_ids = jax.lax.broadcasted_iota(jnp.int32, (HB, D_MODEL), 0)
    lane_ids = jax.lax.broadcasted_iota(jnp.int32, (HB, D_MODEL), 1)
    head_mask = (row_ids >> ROW_HEAD_SHIFT) == (lane_ids >> LANE_HEAD_SHIFT)
    q_rep = jnp.concatenate([q] * NHEAD, axis=0)               # (HB, D)
    q_stack = jnp.where(head_mask, q_rep, 0.0)

    # scores: row h*BN + i, col j  ->  head-h score between tokens i and j
    s = jnp.einsum("nd,md->nm", q_stack, k,
                   preferred_element_type=jnp.float32)         # (HB, BN)

    # suppress cross-batch attention (this is how the two batch elements share
    # one matmul; not part of the original module, which has no mask)
    srow = jax.lax.broadcasted_iota(jnp.int32, (HB, BN), 0)
    scol = jax.lax.broadcasted_iota(jnp.int32, (HB, BN), 1)
    same_batch = ((srow & (BN - 1)) >> SEQ_SHIFT) == (scol >> SEQ_SHIFT)
    s = jnp.where(same_batch, s, NEG_INF)

    # one softmax chain for every (head, batch, query) row
    m = jnp.max(s, axis=-1, keepdims=True)
    e = jnp.exp(s - m)
    den = jnp.sum(e, axis=-1, keepdims=True) + ATTN_EPS

    weighted = jnp.dot(e, v, preferred_element_type=jnp.float32)   # (HB, D)
    normalized = jnp.where(head_mask, weighted / den, 0.0)

    # collapse the H sublane-stacked chunks back to (BN, D)
    attn = normalized[0:BN]
    for h in range(1, NHEAD):
        attn = attn + normalized[h * BN:(h + 1) * BN]

    # --- output projection ---------------------------------------------------
    tmp = jnp.dot(attn, wo_ref[...], preferred_element_type=jnp.float32)

    # --- residual + LayerNorm1 ----------------------------------------------
    g1 = vec_ref[2:3, :D_MODEL]
    be1 = vec_ref[3:4, :D_MODEL]
    y = x + tmp
    mu = jnp.mean(y, axis=-1, keepdims=True)
    var = jnp.mean((y - mu) ** 2, axis=-1, keepdims=True)
    y = (y - mu) * jax.lax.rsqrt(var + LN_EPS) * g1 + be1

    # --- feed-forward: linear1 -> relu -> linear2 ----------------------------
    b1 = vec_ref[0:1, :]            # (1, DIM_FF)
    b2 = vec_ref[1:2, :D_MODEL]     # (1, D_MODEL)
    hdn = jnp.dot(y, w1_ref[...], preferred_element_type=jnp.float32) + b1
    hdn = jnp.maximum(hdn, 0.0)
    ff = jnp.dot(hdn, w2_ref[...], preferred_element_type=jnp.float32) + b2

    # --- residual + LayerNorm3 ----------------------------------------------
    g3 = vec_ref[4:5, :D_MODEL]
    be3 = vec_ref[5:6, :D_MODEL]
    z = y + ff
    mu = jnp.mean(z, axis=-1, keepdims=True)
    var = jnp.mean((z - mu) ** 2, axis=-1, keepdims=True)
    out_ref[...] = (z - mu) * jax.lax.rsqrt(var + LN_EPS) * g3 + be3


@jax.jit
def memory_eff_transformer(x, wq, wk, wv, wo, w1, b1, w2, b2, g1, be1, g3, be3):
    scale = DIM_HEAD ** (-0.5)
    x2d = x.reshape(BN, D_MODEL)

    # pack inputs: fused qkv weight (scale folded into q), one small param table
    wqkv = jnp.concatenate([wq * scale, wk, wv], axis=1)        # (D, 3D)

    def pad_ff(vrow):  # (1, D_MODEL) -> (1, DIM_FF)
        return jnp.pad(vrow, ((0, 0), (0, DIM_FF - vrow.shape[1])))

    vecs = jnp.concatenate(
        [b1, pad_ff(b2), pad_ff(g1), pad_ff(be1), pad_ff(g3), pad_ff(be3)],
        axis=0)                                                 # (6, DIM_FF)

    out2d = pl.pallas_call(
        transformer_kernel,
        out_shape=jax.ShapeDtypeStruct((BN, D_MODEL), jnp.float32),
        grid_spec=pltpu.PrefetchScalarGridSpec(
            num_scalar_prefetch=0,
            grid=(1,),                                  # single step: no per-step overhead
            in_specs=[
                pl.BlockSpec((BN, D_MODEL), lambda i: (0, 0)),          # x slab
                pl.BlockSpec((D_MODEL, 3 * D_MODEL), lambda i: (0, 0)), # W_qkv
                pl.BlockSpec((D_MODEL, D_MODEL), lambda i: (0, 0)),     # W_o
                pl.BlockSpec((D_MODEL, DIM_FF), lambda i: (0, 0)),      # W_1
                pl.BlockSpec((DIM_FF, D_MODEL), lambda i: (0, 0)),      # W_2
                pl.BlockSpec((6, DIM_FF), lambda i: (0, 0)),            # biases / LN params
            ],
            out_specs=pl.BlockSpec((BN, D_MODEL), lambda i: (0, 0)),
        ),
        compiler_params=pltpu.CompilerParams(
            dimension_semantics=("arbitrary",)),
    )(x2d, wqkv, wo, w1, w2, vecs)
    return out2d.reshape(B, N, D_MODEL)


# ---- pure-JAX reference (mirrors the PyTorch forward, eval mode) -----------
def reference(x, wq, wk, wv, wo, w1, b1, w2, b2, g1, be1, g3, be3):
    q = x @ wq
    k = x @ wk
    v = x @ wv

    def split(t):
        return t.reshape(B, N, NHEAD, DIM_HEAD).transpose(0, 2, 1, 3)

    qh, kh, vh = split(q), split(k), split(v)
    qh = qh * (DIM_HEAD ** -0.5)
    s = jnp.einsum("bhid,bhjd->bhij", qh, kh)
    m = jnp.max(s, axis=-1, keepdims=True)
    e = jnp.exp(s - m)
    num = jnp.einsum("bhij,bhjd->bhid", e, vh)
    den = jnp.sum(e, axis=-1, keepdims=True) + ATTN_EPS
    o = (num / den).transpose(0, 2, 1, 3).reshape(B, N, D_MODEL)
    tmp = o @ wo

    def ln(t, g, bb):
        mu = jnp.mean(t, axis=-1, keepdims=True)
        var = jnp.mean((t - mu) ** 2, axis=-1, keepdims=True)
        return (t - mu) * jax.lax.rsqrt(var + LN_EPS) * g + bb

    y = ln(x + tmp, g1[0], be1[0])
    ff = jnp.maximum(y @ w1 + b1[0], 0.0) @ w2 + b2[0]
    return ln(y + ff, g3[0], be3[0])


if __name__ == "__main__":
    key = jax.random.PRNGKey(0)
    keys = jax.random.split(key, 10)

    x = jax.random.normal(keys[0], (B, N, D_MODEL), dtype=jnp.float32)

    # deterministic parameter init (synthetic weights; (in, out) layout)
    wq = jax.random.normal(keys[1], (D_MODEL, D_MODEL), dtype=jnp.float32) * 0.1
    wk = jax.random.normal(keys[2], (D_MODEL, D_MODEL), dtype=jnp.float32) * 0.1
    wv = jax.random.normal(keys[3], (D_MODEL, D_MODEL), dtype=jnp.float32) * 0.1
    wo = jax.random.normal(keys[4], (D_MODEL, D_MODEL), dtype=jnp.float32) * 0.1
    w1 = jax.random.normal(keys[5], (D_MODEL, DIM_FF), dtype=jnp.float32) * 0.1
    b1 = jax.random.normal(keys[6], (1, DIM_FF), dtype=jnp.float32) * 0.1
    w2 = jax.random.normal(keys[7], (DIM_FF, D_MODEL), dtype=jnp.float32) * 0.1
    b2 = jax.random.normal(keys[8], (1, D_MODEL), dtype=jnp.float32) * 0.1
    g1 = jnp.ones((1, D_MODEL), dtype=jnp.float32)
    be1 = jnp.zeros((1, D_MODEL), dtype=jnp.float32)
    g3 = jnp.ones((1, D_MODEL), dtype=jnp.float32)
    be3 = jnp.zeros((1, D_MODEL), dtype=jnp.float32)

    params = (wq, wk, wv, wo, w1, b1, w2, b2, g1, be1, g3, be3)

    out = memory_eff_transformer(x, *params)
    out = jax.block_until_ready(out)

    ref = reference(x, *params)
    np.testing.assert_allclose(np.asarray(out), np.asarray(ref),
                               rtol=1e-4, atol=1e-4)
    print("KERNEL_OK")
</pallas_src>

<mosaic_0001>
module attributes {stable_mosaic.version = 11 : i64} {
  func.func @transformer_kernel(%arg0: i32, %arg1: memref<16x32xf32, #tpu.memory_space<vmem>>, %arg2: memref<32x96xf32, #tpu.memory_space<vmem>>, %arg3: memref<32x32xf32, #tpu.memory_space<vmem>>, %arg4: memref<32x64xf32, #tpu.memory_space<vmem>>, %arg5: memref<64x32xf32, #tpu.memory_space<vmem>>, %arg6: memref<6x64xf32, #tpu.memory_space<vmem>>, %arg7: memref<16x32xf32, #tpu.memory_space<vmem>>) attributes {dimension_semantics = [#tpu.dimension_semantics<arbitrary>], iteration_bounds = array<i64: 1>, scalar_prefetch = 0 : i64, scratch_operands = 0 : i64, tpu.core_type = #tpu.core_type<tc>, window_params = [{pipeline_mode = #tpu.pipeline_mode<synchronous>, transform_indices = @transform_0, window_bounds = array<i64: 16, 32>}, {pipeline_mode = #tpu.pipeline_mode<synchronous>, transform_indices = @transform_1, window_bounds = array<i64: 32, 96>}, {pipeline_mode = #tpu.pipeline_mode<synchronous>, transform_indices = @transform_2, window_bounds = array<i64: 32, 32>}, {pipeline_mode = #tpu.pipeline_mode<synchronous>, transform_indices = @transform_3, window_bounds = array<i64: 32, 64>}, {pipeline_mode = #tpu.pipeline_mode<synchronous>, transform_indices = @transform_4, window_bounds = array<i64: 64, 32>}, {pipeline_mode = #tpu.pipeline_mode<synchronous>, transform_indices = @transform_5, window_bounds = array<i64: 6, 64>}, {pipeline_mode = #tpu.pipeline_mode<synchronous>, transform_indices = @transform_6, window_bounds = array<i64: 16, 32>}]} {
    %c0 = arith.constant 0 : index
    %c0_0 = arith.constant 0 : index
    %0 = vector.load %arg1[%c0, %c0_0] : memref<16x32xf32, #tpu.memory_space<vmem>>, vector<16x32xf32>
    %c0_1 = arith.constant 0 : index
    %c0_2 = arith.constant 0 : index
    %1 = vector.load %arg2[%c0_1, %c0_2] : memref<32x96xf32, #tpu.memory_space<vmem>>, vector<32x96xf32>
    %cst = arith.constant dense<0.000000e+00> : vector<16x96xf32>
    %2 = tpu.matmul %0, %1, %cst {dimension_numbers = #tpu.dot_dimension_numbers<[1], [0], [0], [1], [0, 0, 1, 1], [], []>} : vector<16x32xf32>, vector<32x96xf32>, vector<16x96xf32> -> vector<16x96xf32>
    %3 = vector.extract_strided_slice %2 {offsets = [0, 0], sizes = [16, 32], strides = [1, 1]} : vector<16x96xf32> to vector<16x32xf32>
    %4 = vector.extract_strided_slice %2 {offsets = [0, 32], sizes = [16, 32], strides = [1, 1]} : vector<16x96xf32> to vector<16x32xf32>
    %5 = vector.extract_strided_slice %2 {offsets = [0, 64], sizes = [16, 32], strides = [1, 1]} : vector<16x96xf32> to vector<16x32xf32>
    %6 = tpu.iota {dimensions = array<i32: 0>} : vector<64x32xi32>
    %7 = tpu.iota {dimensions = array<i32: 1>} : vector<64x32xi32>
    %c4_i32 = arith.constant 4 : i32
    %8 = vector.broadcast %c4_i32 : i32 to vector<64x32xi32>
    %9 = arith.shrsi %6, %8 : vector<64x32xi32>
    %c3_i32 = arith.constant 3 : i32
    %10 = vector.broadcast %c3_i32 : i32 to vector<64x32xi32>
    %11 = arith.shrsi %7, %10 : vector<64x32xi32>
    %12 = arith.cmpi eq, %9, %11 : vector<64x32xi32>
    %13 = tpu.concatenate %3, %3, %3, %3 in 0 : vector<16x32xf32>, vector<16x32xf32>, vector<16x32xf32>, vector<16x32xf32> -> vector<64x32xf32>
    %cst_3 = arith.constant 0.000000e+00 : f32
    %14 = vector.broadcast %cst_3 : f32 to vector<64x32xf32>
    %15 = arith.select %12, %13, %14 : vector<64x32xi1>, vector<64x32xf32>
    "tpu.trace_start"() <{level = 10 : i32, message = "nd,md->nm"}> : () -> ()
    %cst_4 = arith.constant dense<0.000000e+00> : vector<64x16xf32>
    %16 = tpu.matmul %15, %4, %cst_4 {dimension_numbers = #tpu.dot_dimension_numbers<[1], [1], [0], [0], [0, 0, 1, 0], [], []>} : vector<64x32xf32>, vector<16x32xf32>, vector<64x16xf32> -> vector<64x16xf32>
    "tpu.trace_stop"() : () -> ()
    %17 = tpu.iota {dimensions = array<i32: 0>} : vector<64x16xi32>
    %18 = tpu.iota {dimensions = array<i32: 1>} : vector<64x16xi32>
    %c15_i32 = arith.constant 15 : i32
    %19 = vector.broadcast %c15_i32 : i32 to vector<64x16xi32>
    %20 = arith.andi %17, %19 : vector<64x16xi32>
    %c3_i32_5 = arith.constant 3 : i32
    %21 = vector.broadcast %c3_i32_5 : i32 to vector<64x16xi32>
    %22 = arith.shrsi %20, %21 : vector<64x16xi32>
    %c3_i32_6 = arith.constant 3 : i32
    %23 = vector.broadcast %c3_i32_6 : i32 to vector<64x16xi32>
    %24 = arith.shrsi %18, %23 : vector<64x16xi32>
    %25 = arith.cmpi eq, %22, %24 : vector<64x16xi32>
    %cst_7 = arith.constant -1.000000e+30 : f32
    %26 = vector.broadcast %cst_7 : f32 to vector<64x16xf32>
    %27 = arith.select %25, %16, %26 : vector<64x16xi1>, vector<64x16xf32>
    %cst_8 = arith.constant dense<0xFF800000> : vector<64xf32>
    %28 = vector.multi_reduction <maximumf>, %27, %cst_8 [1] : vector<64x16xf32> to vector<64xf32>
    %29 = vector.shape_cast %28 : vector<64xf32> to vector<64x1xf32>
    %30 = vector.broadcast %29 : vector<64x1xf32> to vector<64x16xf32>
    %31 = arith.subf %27, %30 : vector<64x16xf32>
    %32 = math.exp %31 : vector<64x16xf32>
    %cst_9 = arith.constant dense<0.000000e+00> : vector<64xf32>
    %33 = vector.multi_reduction <add>, %32, %cst_9 [1] : vector<64x16xf32> to vector<64xf32>
    %34 = vector.shape_cast %33 : vector<64xf32> to vector<64x1xf32>
    %cst_10 = arith.constant 9.99999993E-9 : f32
    %35 = vector.broadcast %cst_10 : f32 to vector<64x1xf32>
    %36 = arith.addf %34, %35 : vector<64x1xf32>
    %cst_11 = arith.constant dense<0.000000e+00> : vector<64x32xf32>
    %37 = tpu.matmul %32, %5, %cst_11 {dimension_numbers = #tpu.dot_dimension_numbers<[1], [0], [0], [1], [0, 0, 1, 1], [], []>} : vector<64x16xf32>, vector<16x32xf32>, vector<64x32xf32> -> vector<64x32xf32>
    %38 = vector.broadcast %36 : vector<64x1xf32> to vector<64x32xf32>
    %39 = arith.divf %37, %38 : vector<64x32xf32>
    %cst_12 = arith.constant 0.000000e+00 : f32
    %40 = vector.broadcast %cst_12 : f32 to vector<64x32xf32>
    %41 = arith.select %12, %39, %40 : vector<64x32xi1>, vector<64x32xf32>
    %42 = vector.extract_strided_slice %41 {offsets = [0, 0], sizes = [16, 32], strides = [1, 1]} : vector<64x32xf32> to vector<16x32xf32>
    %43 = vector.extract_strided_slice %41 {offsets = [16, 0], sizes = [16, 32], strides = [1, 1]} : vector<64x32xf32> to vector<16x32xf32>
    %44 = arith.addf %42, %43 : vector<16x32xf32>
    %45 = vector.extract_strided_slice %41 {offsets = [32, 0], sizes = [16, 32], strides = [1, 1]} : vector<64x32xf32> to vector<16x32xf32>
    %46 = arith.addf %44, %45 : vector<16x32xf32>
    %47 = vector.extract_strided_slice %41 {offsets = [48, 0], sizes = [16, 32], strides = [1, 1]} : vector<64x32xf32> to vector<16x32xf32>
    %48 = arith.addf %46, %47 : vector<16x32xf32>
    %c0_13 = arith.constant 0 : index
    %c0_14 = arith.constant 0 : index
    %49 = vector.load %arg3[%c0_13, %c0_14] : memref<32x32xf32, #tpu.memory_space<vmem>>, vector<32x32xf32>
    %cst_15 = arith.constant dense<0.000000e+00> : vector<16x32xf32>
    %50 = tpu.matmul %48, %49, %cst_15 {dimension_numbers = #tpu.dot_dimension_numbers<[1], [0], [0], [1], [0, 0, 1, 1], [], []>} : vector<16x32xf32>, vector<32x32xf32>, vector<16x32xf32> -> vector<16x32xf32>
    %c2 = arith.constant 2 : index
    %c0_16 = arith.constant 0 : index
    %51 = vector.load %arg6[%c2, %c0_16] : memref<6x64xf32, #tpu.memory_space<vmem>>, vector<1x32xf32>
    %c3 = arith.constant 3 : index
    %c0_17 = arith.constant 0 : index
    %52 = vector.load %arg6[%c3, %c0_17] : memref<6x64xf32, #tpu.memory_space<vmem>>, vector<1x32xf32>
    %53 = arith.addf %0, %50 : vector<16x32xf32>
    %cst_18 = arith.constant dense<0.000000e+00> : vector<16xf32>
    %54 = vector.multi_reduction <add>, %53, %cst_18 [1] : vector<16x32xf32> to vector<16xf32>
    %55 = vector.shape_cast %54 : vector<16xf32> to vector<16x1xf32>
    %cst_19 = arith.constant 3.200000e+01 : f32
    %56 = vector.broadcast %cst_19 : f32 to vector<16x1xf32>
    %57 = arith.divf %55, %56 : vector<16x1xf32>
    %58 = vector.broadcast %57 : vector<16x1xf32> to vector<16x32xf32>
    %59 = arith.subf %53, %58 : vector<16x32xf32>
    %60 = arith.mulf %59, %59 : vector<16x32xf32>
    %cst_20 = arith.constant dense<0.000000e+00> : vector<16xf32>
    %61 = vector.multi_reduction <add>, %60, %cst_20 [1] : vector<16x32xf32> to vector<16xf32>
    %62 = vector.shape_cast %61 : vector<16xf32> to vector<16x1xf32>
    %cst_21 = arith.constant 3.200000e+01 : f32
    %63 = vector.broadcast %cst_21 : f32 to vector<16x1xf32>
    %64 = arith.divf %62, %63 : vector<16x1xf32>
    %65 = vector.broadcast %57 : vector<16x1xf32> to vector<16x32xf32>
    %66 = arith.subf %53, %65 : vector<16x32xf32>
    %cst_22 = arith.constant 9.99999974E-6 : f32
    %67 = vector.broadcast %cst_22 : f32 to vector<16x1xf32>
    %68 = arith.addf %64, %67 : vector<16x1xf32>
    %69 = math.rsqrt %68 : vector<16x1xf32>
    %70 = vector.broadcast %69 : vector<16x1xf32> to vector<16x32xf32>
    %71 = arith.mulf %66, %70 : vector<16x32xf32>
    %72 = vector.broadcast %51 : vector<1x32xf32> to vector<16x32xf32>
    %73 = arith.mulf %71, %72 : vector<16x32xf32>
    %74 = vector.broadcast %52 : vector<1x32xf32> to vector<16x32xf32>
    %75 = arith.addf %73, %74 : vector<16x32xf32>
    %c0_23 = arith.constant 0 : index
    %c0_24 = arith.constant 0 : index
    %76 = vector.load %arg6[%c0_23, %c0_24] : memref<6x64xf32, #tpu.memory_space<vmem>>, vector<1x64xf32>
    %c1 = arith.constant 1 : index
    %c0_25 = arith.constant 0 : index
    %77 = vector.load %arg6[%c1, %c0_25] : memref<6x64xf32, #tpu.memory_space<vmem>>, vector<1x32xf32>
    %c0_26 = arith.constant 0 : index
    %c0_27 = arith.constant 0 : index
    %78 = vector.load %arg4[%c0_26, %c0_27] : memref<32x64xf32, #tpu.memory_space<vmem>>, vector<32x64xf32>
    %cst_28 = arith.constant dense<0.000000e+00> : vector<16x64xf32>
    %79 = tpu.matmul %75, %78, %cst_28 {dimension_numbers = #tpu.dot_dimension_numbers<[1], [0], [0], [1], [0, 0, 1, 1], [], []>} : vector<16x32xf32>, vector<32x64xf32>, vector<16x64xf32> -> vector<16x64xf32>
    %80 = vector.broadcast %76 : vector<1x64xf32> to vector<16x64xf32>
    %81 = arith.addf %79, %80 : vector<16x64xf32>
    %cst_29 = arith.constant 0.000000e+00 : f32
    %82 = vector.broadcast %cst_29 : f32 to vector<16x64xf32>
    %83 = arith.maximumf %81, %82 : vector<16x64xf32>
    %c0_30 = arith.constant 0 : index
    %c0_31 = arith.constant 0 : index
    %84 = vector.load %arg5[%c0_30, %c0_31] : memref<64x32xf32, #tpu.memory_space<vmem>>, vector<64x32xf32>
    %cst_32 = arith.constant dense<0.000000e+00> : vector<16x32xf32>
    %85 = tpu.matmul %83, %84, %cst_32 {dimension_numbers = #tpu.dot_dimension_numbers<[1], [0], [0], [1], [0, 0, 1, 1], [], []>} : vector<16x64xf32>, vector<64x32xf32>, vector<16x32xf32> -> vector<16x32xf32>
    %86 = vector.broadcast %77 : vector<1x32xf32> to vector<16x32xf32>
    %87 = arith.addf %85, %86 : vector<16x32xf32>
    %c4 = arith.constant 4 : index
    %c0_33 = arith.constant 0 : index
    %88 = vector.load %arg6[%c4, %c0_33] : memref<6x64xf32, #tpu.memory_space<vmem>>, vector<1x32xf32>
    %c5 = arith.constant 5 : index
    %c0_34 = arith.constant 0 : index
    %89 = vector.load %arg6[%c5, %c0_34] : memref<6x64xf32, #tpu.memory_space<vmem>>, vector<1x32xf32>
    %90 = arith.addf %75, %87 : vector<16x32xf32>
    %cst_35 = arith.constant dense<0.000000e+00> : vector<16xf32>
    %91 = vector.multi_reduction <add>, %90, %cst_35 [1] : vector<16x32xf32> to vector<16xf32>
    %92 = vector.shape_cast %91 : vector<16xf32> to vector<16x1xf32>
    %cst_36 = arith.constant 3.200000e+01 : f32
    %93 = vector.broadcast %cst_36 : f32 to vector<16x1xf32>
    %94 = arith.divf %92, %93 : vector<16x1xf32>
    %95 = vector.broadcast %94 : vector<16x1xf32> to vector<16x32xf32>
    %96 = arith.subf %90, %95 : vector<16x32xf32>
    %97 = arith.mulf %96, %96 : vector<16x32xf32>
    %cst_37 = arith.constant dense<0.000000e+00> : vector<16xf32>
    %98 = vector.multi_reduction <add>, %97, %cst_37 [1] : vector<16x32xf32> to vector<16xf32>
    %99 = vector.shape_cast %98 : vector<16xf32> to vector<16x1xf32>
    %cst_38 = arith.constant 3.200000e+01 : f32
    %100 = vector.broadcast %cst_38 : f32 to vector<16x1xf32>
    %101 = arith.divf %99, %100 : vector<16x1xf32>
    %102 = vector.broadcast %94 : vector<16x1xf32> to vector<16x32xf32>
    %103 = arith.subf %90, %102 : vector<16x32xf32>
    %cst_39 = arith.constant 9.99999974E-6 : f32
    %104 = vector.broadcast %cst_39 : f32 to vector<16x1xf32>
    %105 = arith.addf %101, %104 : vector<16x1xf32>
    %106 = math.rsqrt %105 : vector<16x1xf32>
    %107 = vector.broadcast %106 : vector<16x1xf32> to vector<16x32xf32>
    %108 = arith.mulf %103, %107 : vector<16x32xf32>
    %109 = vector.broadcast %88 : vector<1x32xf32> to vector<16x32xf32>
    %110 = arith.mulf %108, %109 : vector<16x32xf32>
    %111 = vector.broadcast %89 : vector<1x32xf32> to vector<16x32xf32>
    %112 = arith.addf %110, %111 : vector<16x32xf32>
    %c0_40 = arith.constant 0 : index
    %c0_41 = arith.constant 0 : index
    %113 = vector.load %arg7[%c0_40, %c0_41] : memref<16x32xf32, #tpu.memory_space<vmem>>, vector<16x32xf32>
    tpu.vector_store %arg7[%c0_40, %c0_41], %112 {strides = array<i32>} : memref<16x32xf32, #tpu.memory_space<vmem>>, vector<16x32xf32>,
    return
  }
  func.func @transform_0(%arg0: i32) -> (i32, i32) {
    %c0_i32 = arith.constant 0 : i32
    %c0_i32_0 = arith.constant 0 : i32
    %c0_i32_1 = arith.constant 0 : i32
    return %c0_i32, %c0_i32_0 : i32, i32
  }
  func.func @transform_1(%arg0: i32) -> (i32, i32) {
    %c0_i32 = arith.constant 0 : i32
    %c0_i32_0 = arith.constant 0 : i32
    %c0_i32_1 = arith.constant 0 : i32
    return %c0_i32, %c0_i32_0 : i32, i32
  }
  func.func @transform_2(%arg0: i32) -> (i32, i32) {
    %c0_i32 = arith.constant 0 : i32
    %c0_i32_0 = arith.constant 0 : i32
    %c0_i32_1 = arith.constant 0 : i32
    return %c0_i32, %c0_i32_0 : i32, i32
  }
  func.func @transform_3(%arg0: i32) -> (i32, i32) {
    %c0_i32 = arith.constant 0 : i32
    %c0_i32_0 = arith.constant 0 : i32
    %c0_i32_1 = arith.constant 0 : i32
    return %c0_i32, %c0_i32_0 : i32, i32
  }
  func.func @transform_4(%arg0: i32) -> (i32, i32) {
    %c0_i32 = arith.constant 0 : i32
    %c0_i32_0 = arith.constant 0 : i32
    %c0_i32_1 = arith.constant 0 : i32
    return %c0_i32, %c0_i32_0 : i32, i32
  }
  func.func @transform_5(%arg0: i32) -> (i32, i32) {
    %c0_i32 = arith.constant 0 : i32
    %c0_i32_0 = arith.constant 0 : i32
    %c0_i32_1 = arith.constant 0 : i32
    return %c0_i32, %c0_i32_0 : i32, i32
  }
  func.func @transform_6(%arg0: i32) -> (i32, i32) {
    %c0_i32 = arith.constant 0 : i32
    %c0_i32_0 = arith.constant 0 : i32
    %c0_i32_1 = arith.constant 0 : i32
    return %c0_i32, %c0_i32_0 : i32, i32
  }
}

</mosaic_0001>

<bundles_post_ra>
// kernel: memory_eff_transformer.1
= control target key start
LH: loop header
LB: loop body
LE: loop exit
PB: predicated region body
PF: predicated region fallthrough
CT: control target
= control target key end

     0   :  { %vm30_vm0 = vcmask 261120   ;;  %s1527_s0 = inlined_call_operand.vmem [shape: f32[16,32], index: 0, kind: input, shape index: {}]   ;;  %s1528_s1 = inlined_call_operand.vmem [shape: f32[32,96], index: 1, kind: input, shape index: {}]   ;;  %s1529_s2 = inlined_call_operand.vmem [shape: f32[32,32], index: 2, kind: input, shape index: {}]   ;;  %s1530_s3 = inlined_call_operand.vmem [shape: f32[32,64], index: 3, kind: input, shape index: {}]   ;;  %s1531_s4 = inlined_call_operand.vmem [shape: f32[64,32], index: 4, kind: input, shape index: {}]   ;;  %s1532_s5 = inlined_call_operand.vmem [shape: f32[6,64], index: 5, kind: input, shape index: {}]   ;;  %s1533_s6 = inlined_call_operand.hbm [shape: f32[16,32], index: 6, kind: output, shape index: {}]  }
   0x1   :  { %v26_v0 = vld [vmem:[%s1528_s1] sm:$0xff]  ;;  %v27_v1 = vld [vmem:[%s1528_s1 + $0x8] sm:$0xff]  ;;  %v28_v2 = vld [vmem:[%s1528_s1 + $0x10] sm:$0xff] }
   0x2   :  { %v1104_v3 = vpack.c.bf16 %v27_v1, %v26_v0  ;;  %v29_v4 = vld [vmem:[%s1528_s1 + $0x18] sm:$0xff]  ;;  %v1290_v5 = vld [vmem:[%s1527_s0] sm:$0xff] }
   0x3   :  { %v1108_v6 = vpack.c.bf16 %v29_v4, %v28_v2  ;;  %1028 = vmatprep.mubr.msk.f32.mxu0 %vm30_vm0, %v1290_v5 }
   0x4   :  { %11 = vsyncpa [#allocation3], 0  ;;  %1105 = vmatprep.subr.bf16.mxu0 %v1104_v3  ;;  %v1297_v7 = vld [vmem:[%s1527_s0 + $0x8] sm:$0xff]  ;;  %v112_v8 = vlaneseq  ;;  %s1235_s0 = smov 96   ;;  %vm319_vm12 = vcmask 130048   ;;  %s1236_s1 = smov 64  }
   0x5   :  { %1107 = vmatpush3.bf16.msra.mxu0 %v1104_v3  ;;  %vm1113_vm3 = vmpackc.low %vm30_vm0, %vm30_vm0  ;;  %s1237_s23 = smov [#allocation2]  }
   0x6   :  { %1109 = vmatprep.subr.bf16.mxu0 %v1108_v6  ;;  %v113_v9 = vshrl.u32 %v112_v8, 7  ;;  %v122_v10 = vand.u32 127, %v112_v8  ;;  %s929_s24 = sshll.u32 %s1237_s23, 4  ;;  %s930_s24 = int_to_ptr.vmem [resolvable:$true] %s929_s24 }
   0x7   :  { %s1211_s25 = scalar_lea.vmem %s930_s24, 256  ;;  %p1216_p1 = scmp.lt.s32.totalorder %s930_s24, %s930_s24 }
   0x8   :  { %v1301_v11 = vadd.s32 16, %v113_v9  ;;  %v123_v12 = vshra.s32 %v113_v9, 4  ;;  %v1303_v13 = vshra.s32 %v122_v10, 3  ;;  %v114_v25 = vadd.s32 8, %v113_v9  ;;  %p1212_p0 = scmp.ne.s32.totalorder %s930_s24, %s1211_s25  ;;  %p1217_p2 = scmp.lt.s32.totalorder %s1211_s25, %s1211_s25 }
   0x9   :  { %1111 = vmatpush3.bf16.msra.mxu0 %v1108_v6  ;;  %v116_v26 = vadd.s32 24, %v113_v9  ;;  %v1327_v27 = vadd.s32 32, %v113_v9  ;;  %v118_v31 = vadd.s32 40, %v113_v9  ;;  %v1330_v33 = vadd.s32 48, %v113_v9 }
   0xa   :  { %v125_v14 = vshra.s32 %v1301_v11, 4  ;;  %vm1307_vm1 = vcmp.eq.s32.totalorder %v123_v12, %v1303_v13  ;;  %v124_v29 = vshra.s32 %v114_v25, 4  ;;  %v120_v37 = vadd.s32 56, %v113_v9  ;;  %p1218_p3 = por %p1217_p2, %p1216_p1 }
   0xb   :  { %v126_v30 = vshra.s32 %v116_v26, 4  ;;  %v127_v32 = vshra.s32 %v1327_v27, 4  ;;  %v128_v36 = vshra.s32 %v118_v31, 4  ;;  %v129_v39 = vshra.s32 %v1330_v33, 4 }
   0xc   :  { %1029 = vmatmul.mubr.msk.f32.vlgmr.msra.gmra.mrb[0].mxu0 %vm30_vm0, %v1297_v7  ;;  %vm1312_vm2 = vcmp.eq.s32.totalorder %v125_v14, %v1303_v13  ;;  %vm1333_vm4 = vcmp.eq.s32.totalorder %v124_v29, %v1303_v13  ;;  %v130_v44 = vshra.s32 %v120_v37, 4  ;;  %v288_v50 = vand.u32 15, %v114_v25  ;;  %p1219_p4 = pnand %p1218_p3, %p1212_p0 }
   0xd   :  { %vm1338_vm5 = vcmp.eq.s32.totalorder %v126_v30, %v1303_v13  ;;  %vm1343_vm6 = vcmp.eq.s32.totalorder %v127_v32, %v1303_v13  ;;  %vm1357_vm7 = vcmp.eq.s32.totalorder %v128_v36, %v1303_v13  ;;  %vm1363_vm8 = vcmp.eq.s32.totalorder %v129_v39, %v1303_v13 }
   0xe   :  { %vm1373_vm9 = vcmp.eq.s32.totalorder %v130_v44, %v1303_v13  ;;  %v287_v51 = vand.u32 15, %v113_v9  ;;  %v290_v52 = vand.u32 15, %v116_v26  ;;  %v296_v53 = vshra.s32 %v288_v50, 3 }
   0xf   :  { %v289_v56 = vand.u32 15, %v1301_v11  ;;  %v292_v60 = vand.u32 15, %v118_v31  ;;  %v291_v8 = vand.u32 15, %v1327_v27 }
  0x10   :  { %v295_v54 = vshra.s32 %v287_v51, 3  ;;  %v298_v55 = vshra.s32 %v290_v52, 3  ;;  %vm304_vm10 = vcmp.eq.s32.totalorder %v296_v53, %v1303_v13 }
  0x11   :  { %v297_v59 = vshra.s32 %v289_v56, 3  ;;  %v300_v6 = vshra.s32 %v292_v60, 3  ;;  %v299_v12 = vshra.s32 %v291_v8, 3 }
  0x12   :  { %vm303_vm11 = vcmp.eq.s32.totalorder %v295_v54, %v1303_v13  ;;  %vm306_vm13 = vcmp.eq.s32.totalorder %v298_v55, %v1303_v13 }
  0x13   :  { %vm305_vm14 = vcmp.eq.s32.totalorder %v297_v59, %v1303_v13  ;;  %vm308_vm15 = vcmp.eq.s32.totalorder %v300_v6, %v1303_v13 }
  0xdf   :  { %v1030_v17 = vpop.f32.mrb[0].mxu0 }
  0xe0   :  { %v103_v18 = vpop.f32.mrb[1].mxu0  ;;  %v141_v40 = vsel %vm1333_vm4, %v1030_v17, 0.0  ;;  %v143_v41 = vsel %vm1338_vm5, %v1030_v17, 0.0  ;;  %v145_v46 = vsel %vm1357_vm7, %v1030_v17, 0.0  ;;  %v147_v49 = vsel %vm1373_vm9, %v1030_v17, 0.0 }
  0xe1   :  { %v140_v19 = vsel %vm1307_vm1, %v103_v18, 0.0  ;;  %v142_v20 = vsel %vm1312_vm2, %v103_v18, 0.0  ;;  %v1320_v21 = vpack.i.bf16 %v1030_v17, %v103_v18  ;;  %v144_v42 = vsel %vm1343_vm6, %v103_v18, 0.0 }
  0xe2   :  { %1035 = vmatprep.mubr.msk.f32.mxu0 %vm30_vm0, %v140_v19  ;;  %1038 = vmatprep.mubr.msk.f32.mxu1 %vm30_vm0, %v142_v20  ;;  %v146_v47 = vsel %vm1363_vm8, %v103_v18, 0.0  ;;  %v294_v17 = vand.u32 15, %v120_v37 }
  0xe3   :  { %1162 = vrot.lane.b32.xlu0 %v1320_v21, %s1235_s0 }
 0x155   :  { %v1163_v22 = vpop.permute.xlu0 %1162 }
 0x156   :  { %v1165_v23 = vunpack.i.h.bf16 %v1163_v22  ;;  %v1164_v24 = vunpack.i.l.bf16 %v1163_v22  ;;  %v302_v22 = vshra.s32 %v294_v17, 3 }
 0x158   :  { %v1112_v28 = vpack.c.bf16 %v1165_v23, %v1164_v24  ;;  %v293_v23 = vand.u32 15, %v1330_v33 }
 0x15a   :  { %1114 = vmatprep.subr.msk.bf16.mxu0 %vm1113_vm3, %v1112_v28  ;;  %1154 = vmatprep.subr.msk.bf16.mxu1 %vm1113_vm3, %v1112_v28  ;;  %v301_v26 = vshra.s32 %v293_v23, 3  ;;  %v566_v23 = vld [vmem:[%s1529_s2 + $0x8] sm:$0xff] }
 0x15b   :  { %1117 = vmatpush3.bf16.xpose.msk.msra.mxu0 %vm1113_vm3, %v1112_v28  ;;  %1155 = vmatpush3.bf16.xpose.msk.msra.mxu1 %vm1113_vm3, %v1112_v28  ;;  %vm307_vm3 = vcmp.eq.s32.totalorder %v299_v12, %v1303_v13 }
 0x162   :  { %1036 = vmatmul.mubr.msk.f32.vlgmr.msra.gmra.mrb[2].mxu0 %vm30_vm0, %v141_v40  ;;  %1039 = vmatmul.mubr.msk.f32.vlgmr.msra.gmra.mrb[0].mxu1 %vm30_vm0, %v143_v41 }
 0x163   :  { %1041 = vmatprep.mubr.msk.f32.mxu1 %vm30_vm0, %v144_v42 }
 0x166   :  { %1042 = vmatmul.mubr.msk.f32.gmra.mrb[2].mxu1 %vm30_vm0, %v145_v46 }
 0x167   :  { %1044 = vmatprep.mubr.msk.f32.mxu1 %vm30_vm0, %v146_v47 }
 0x16a   :  { %1045 = vmatmul.mubr.msk.f32.gmra.mrb[4].mxu1 %vm30_vm0, %v147_v49 }
 0x235   :  { %v1037_v57 = vpop.f32.mrb[2].mxu0  ;;  %v1040_v58 = vpop.f32.mrb[0].mxu1 }
 0x236   :  { %v312_v61 = vsel %vm304_vm10, %v1037_v57, -1e+30  ;;  %v248_v62 = vpop.f32.mrb[3].mxu0  ;;  %v258_v63 = vpop.f32.mrb[1].mxu1  ;;  %v314_v2 = vsel %vm306_vm13, %v1040_v58, -1e+30  ;;  %vm310_vm10 = vcmp.eq.s32.totalorder %v302_v22, %v1303_v13 }
 0x237   :  { %v311_v0 = vsel %vm303_vm11, %v248_v62, -1e+30  ;;  %v323_v1 = vsel %vm319_vm12, %v312_v61, -inf  ;;  %v329_v10 = vsel %vm319_vm12, %v314_v2, -inf  ;;  %v313_v11 = vsel %vm305_vm14, %v258_v63, -1e+30 }
 0x238   :  { %324 = vmax.xlane.f32.xlu1 %v323_v1  ;;  %v320_v3 = vsel %vm319_vm12, %v311_v0, -inf  ;;  %v326_v19 = vsel %vm319_vm12, %v313_v11, -inf  ;;  %vm309_vm11 = vcmp.eq.s32.totalorder %v301_v26, %v1303_v13  ;;  %v565_v22 = vld [vmem:[%s1529_s2] sm:$0xff]  ;;  %v568_v26 = vld [vmem:[%s1529_s2 + $0x18] sm:$0xff] }
 0x239   :  { %v1043_v4 = vpop.f32.mrb[2].mxu1  ;;  %321 = vmax.xlane.f32.xlu0 %v320_v3 }
 0x23a   :  { %v268_v9 = vpop.f32.mrb[3].mxu1  ;;  %v316_v20 = vsel %vm308_vm15, %v1043_v4, -1e+30 }
 0x23b   :  { %v335_v24 = vsel %vm319_vm12, %v316_v20, -inf  ;;  %v315_v25 = vsel %vm307_vm3, %v268_v9, -1e+30 }
 0x23c   :  { %330 = vmax.xlane.f32.xlu1 %v329_v10  ;;  %v332_v27 = vsel %vm319_vm12, %v315_v25, -inf }
 0x23d   :  { %v1046_v14 = vpop.f32.mrb[4].mxu1 }
 0x23e   :  { %v278_v18 = vpop.f32.mrb[5].mxu1  ;;  %v318_v28 = vsel %vm310_vm10, %v1046_v14, -1e+30 }
 0x23f   :  { %v341_v29 = vsel %vm319_vm12, %v318_v28, -inf  ;;  %v317_v30 = vsel %vm309_vm11, %v278_v18, -1e+30 }
 0x240   :  { %327 = vmax.xlane.f32.xlu1 %v326_v19  ;;  %v338_v31 = vsel %vm319_vm12, %v317_v30, -inf }
 0x244   :  { %336 = vmax.xlane.f32.xlu1 %v335_v24  ;;  %v1122_v24 = vpack.c.bf16 %v566_v23, %v565_v22 }
 0x246   :  { %1123 = vmatprep.subr.bf16.mxu1 %v1122_v24 }
 0x247   :  { %1125 = vmatpush3.bf16.msra.mxu1 %v1122_v24 }
 0x248   :  { %333 = vmax.xlane.f32.xlu1 %v332_v27 }
 0x24c   :  { %342 = vmax.xlane.f32.xlu1 %v341_v29 }
 0x250   :  { %339 = vmax.xlane.f32.xlu1 %v338_v31 }
 0x261   :  { %1167 = vrot.lane.b32.xlu1 %v1320_v21, %s1236_s1 }
 0x2c5   :  { %v325_v32 = vpop.xlane.xlu1 %324 }
 0x2c6   :  { %v345_v33 = vsub.f32 %v312_v61, %v325_v32  ;;  %v322_v36 = vpop.xlane.xlu0 %321 }
 0x2c7   :  { %v344_v37 = vsub.f32 %v311_v0, %v322_v36 }
 0x2c8   :  { %v354_v39 = vmul.f32 1.442695, %v345_v33 }
 0x2c9   :  { %v352_v40 = vmul.f32 1.442695, %v344_v37  ;;  %v331_v41 = vpop.xlane.xlu1 %330 }
 0x2ca   :  { %1171 = vpow2.f32 %v354_v39  ;;  %v347_v42 = vsub.f32 %v314_v2, %v331_v41 }
 0x2cb   :  { %1173 = vpow2.f32 %v352_v40 }
 0x2cc   :  { %v358_v13 = vmul.f32 1.442695, %v347_v42 }
 0x2cd   :  { %v328_v44 = vpop.xlane.xlu1 %327 }
 0x2ce   :  { %1175 = vpow2.f32 %v358_v13  ;;  %v346_v46 = vsub.f32 %v313_v11, %v328_v44 }
 0x2d0   :  { %v356_v47 = vmul.f32 1.442695, %v346_v46 }
 0x2d1   :  { %v337_v49 = vpop.xlane.xlu1 %336 }
 0x2d2   :  { %1177 = vpow2.f32 %v356_v47  ;;  %v349_v50 = vsub.f32 %v316_v20, %v337_v49 }
 0x2d4   :  { %v1172_v51 = vpop.eup %1171  ;;  %v362_v21 = vmul.f32 1.442695, %v349_v50 }
 0x2d5   :  { %v1174_v52 = vpop.eup %1173  ;;  %v334_v53 = vpop.xlane.xlu1 %333  ;;  %v371_v54 = vsel %vm319_vm12, %v1172_v51, 0.0 }
 0x2d6   :  { %1179 = vpow2.f32 %v362_v21  ;;  %v348_v55 = vsub.f32 %v315_v25, %v334_v53  ;;  %372 = vadd.xlane.f32.xlu0 %v371_v54  ;;  %1051 = vmatprep.mubr.msk.f32.mxu0 %vm319_vm12, %v1174_v52  ;;  %v368_v60 = vsel %vm319_vm12, %v1174_v52, 0.0  ;;  %v567_v25 = vld [vmem:[%s1529_s2 + $0x10] sm:$0xff] }
 0x2d7   :  { %v1126_v27 = vpack.c.bf16 %v568_v26, %v567_v25 }
 0x2d8   :  { %v1176_v56 = vpop.eup %1175  ;;  %v360_v57 = vmul.f32 1.442695, %v348_v55 }
 0x2d9   :  { %v343_v58 = vpop.xlane.xlu1 %342  ;;  %v377_v59 = vsel %vm319_vm12, %v1176_v56, 0.0  ;;  %1127 = vmatprep.subr.bf16.mxu1 %v1126_v27 }
 0x2da   :  { %1181 = vpow2.f32 %v360_v57  ;;  %378 = vadd.xlane.f32.xlu1 %v377_v59  ;;  %369 = vadd.xlane.f32.xlu0 %v368_v60  ;;  %v351_v62 = vsub.f32 %v318_v28, %v343_v58 }
 0x2db   :  { %1129 = vmatpush3.bf16.msra.mxu1 %v1126_v27 }
 0x2dc   :  { %v1178_v61 = vpop.eup %1177  ;;  %v366_v3 = vmul.f32 1.442695, %v351_v62 }
 0x2dd   :  { %v340_v63 = vpop.xlane.xlu1 %339  ;;  %v374_v0 = vsel %vm319_vm12, %v1178_v61, 0.0 }
 0x2de   :  { %v350_v1 = vsub.f32 %v317_v30, %v340_v63  ;;  %375 = vadd.xlane.f32.xlu0 %v374_v0 }
 0x2e0   :  { %v1180_v2 = vpop.eup %1179  ;;  %v364_v4 = vmul.f32 1.442695, %v350_v1 }
 0x2e1   :  { %v1168_v6 = vpop.permute.xlu1 %1167  ;;  %v383_v8 = vsel %vm319_vm12, %v1180_v2, 0.0 }
 0x2e2   :  { %1183 = vpow2.f32 %v364_v4  ;;  %v1170_v9 = vunpack.i.h.bf16 %v1168_v6  ;;  %v1169_v10 = vunpack.i.l.bf16 %v1168_v6  ;;  %384 = vadd.xlane.f32.xlu0 %v383_v8 }
 0x2e3   :  { %1185 = vpow2.f32 %v366_v3 }
 0x2e4   :  { %v1182_v11 = vpop.eup %1181  ;;  %v1118_v12 = vpack.c.bf16 %v1170_v9, %v1169_v10 }
 0x2e5   :  { %v380_v14 = vsel %vm319_vm12, %v1182_v11, 0.0 }
 0x2e6   :  { %1119 = vmatprep.subr.bf16.mxu0 %v1118_v12  ;;  %381 = vadd.xlane.f32.xlu0 %v380_v14 }
 0x2e7   :  { %1121 = vmatpush3.bf16.msra.mxu0 %v1118_v12 }
 0x2ea   :  { %1052 = vmatmul.mubr.msk.f32.vlgmr.msra.gmra.mrb[4].mxu0 %vm319_vm12, %v1172_v51 }
 0x2eb   :  { %1054 = vmatprep.mubr.msk.f32.mxu0 %vm319_vm12, %v1178_v61 }
 0x2ec   :  { %v1184_v17 = vpop.eup %1183 }
 0x2ed   :  { %v386_v18 = vsel %vm319_vm12, %v1184_v17, 0.0  ;;  %v1186_v19 = vpop.eup %1185 }
 0x2ee   :  { %1055 = vmatmul.mubr.msk.f32.gmra.mrb[6].mxu0 %vm319_vm12, %v1176_v56  ;;  %387 = vadd.xlane.f32.xlu0 %v386_v18  ;;  %v389_v20 = vsel %vm319_vm12, %v1186_v19, 0.0 }
 0x2ef   :  { %1057 = vmatprep.mubr.msk.f32.mxu0 %vm319_vm12, %v1182_v11 }
 0x2f2   :  { %1058 = vmatmul.mubr.msk.f32.gmra.mrb[8].mxu0 %vm319_vm12, %v1180_v2  ;;  %390 = vadd.xlane.f32.xlu0 %v389_v20 }
 0x2f3   :  { %1060 = vmatprep.mubr.msk.f32.mxu0 %vm319_vm12, %v1184_v17 }
 0x2f6   :  { %1061 = vmatmul.mubr.msk.f32.gmra.mrb[10].mxu0 %vm319_vm12, %v1186_v19 }
 0x363   :  { %v373_v28 = vpop.xlane.xlu0 %372 }
 0x364   :  { %v393_v36 = vadd.f32 1e-08, %v373_v28 }
 0x366   :  { %1187 = vrcp.f32 %v393_v36 }
 0x367   :  { %v370_v29 = vpop.xlane.xlu0 %369  ;;  %v379_v33 = vpop.xlane.xlu1 %378 }
 0x368   :  { %v392_v37 = vadd.f32 1e-08, %v370_v29  ;;  %v395_v40 = vadd.f32 1e-08, %v379_v33 }
 0x36a   :  { %1189 = vrcp.f32 %v392_v37  ;;  %v696_v37 = vld [vmem:[%s1530_s3 + $0x8] sm:$0xff] }
 0x36b   :  { %v376_v30 = vpop.xlane.xlu0 %375  ;;  %1191 = vrcp.f32 %v395_v40  ;;  %v697_v40 = vld [vmem:[%s1530_s3 + $0x10] sm:$0xff] }
 0x36c   :  { %v394_v41 = vadd.f32 1e-08, %v376_v30 }
 0x36e   :  { %1193 = vrcp.f32 %v394_v41  ;;  %v698_v41 = vld [vmem:[%s1530_s3 + $0x18] sm:$0xff] }
 0x36f   :  { %v385_v31 = vpop.xlane.xlu0 %384 }
 0x370   :  { %v397_v42 = vadd.f32 1e-08, %v385_v31  ;;  %v1188_v51 = vpop.eup %1187 }
 0x372   :  { %1195 = vrcp.f32 %v397_v42  ;;  %v1134_v42 = vpack.c.bf16 %v698_v41, %v697_v40  ;;  %v970_v40 = vld [vmem:[%s1532_s5 + $0x4] ss:$0 sm:$0xff] }
 0x373   :  { %v382_v32 = vpop.xlane.xlu0 %381 }
 0x374   :  { %v396_v13 = vadd.f32 1e-08, %v382_v32  ;;  %v1190_v21 = vpop.eup %1189 }
 0x375   :  { %v1192_v53 = vpop.eup %1191 }
 0x376   :  { %1197 = vrcp.f32 %v396_v13  ;;  %v786_v13 = vld [vmem:[%s1531_s4] sm:$0xff] }
 0x378   :  { %v1194_v56 = vpop.eup %1193 }
 0x37b   :  { %v388_v39 = vpop.xlane.xlu0 %387 }
 0x37c   :  { %v398_v47 = vadd.f32 1e-08, %v388_v39  ;;  %v1196_v62 = vpop.eup %1195 }
 0x37f   :  { %v391_v44 = vpop.xlane.xlu0 %390 }
 0x380   :  { %v399_v46 = vadd.f32 1e-08, %v391_v44  ;;  %v1198_v3 = vpop.eup %1197  ;;  %v787_v44 = vld [vmem:[%s1531_s4 + $0x8] sm:$0xff] }
 0x382   :  { %1199 = vrcp.f32 %v399_v46  ;;  %v788_v46 = vld [vmem:[%s1531_s4 + $0x10] sm:$0xff] }
 0x383   :  { %1201 = vrcp.f32 %v398_v47  ;;  %v1138_v47 = vpack.c.bf16 %v787_v44, %v786_v13  ;;  %v971_v44 = vld [vmem:[%s1532_s5 + $0x5] ss:$0 sm:$0xff] }
 0x385   :  { %1139 = vmatprep.subr.bf16.mxu1 %v1138_v47 }
 0x38c   :  { %v1200_v10 = vpop.eup %1199 }
 0x38d   :  { %v1202_v12 = vpop.eup %1201 }
 0x3bd   :  { %v1053_v49 = vpop.f32.mrb[4].mxu0 }
 0x3be   :  { %v496_v50 = vpop.f32.mrb[5].mxu0  ;;  %v538_v52 = vmul.f32 %v1188_v51, %v1053_v49  ;;  %v789_v49 = vld [vmem:[%s1531_s4 + $0x18] sm:$0xff]  ;;  %v790_v51 = vld [vmem:[%s1531_s4 + $0x20] sm:$0xff] }
 0x3bf   :  { %v536_v54 = vmul.f32 %v1190_v21, %v496_v50  ;;  %v1142_v50 = vpack.c.bf16 %v789_v49, %v788_v46  ;;  %v791_v21 = vld [vmem:[%s1531_s4 + $0x28] sm:$0xff] }
 0x3c0   :  { %v552_v60 = vsel %vm1333_vm4, %v538_v52, 0.0  ;;  %v1146_v52 = vpack.c.bf16 %v791_v21, %v790_v51 }
 0x3c1   :  { %v1056_v55 = vpop.f32.mrb[6].mxu0  ;;  %v551_v63 = vsel %vm1307_vm1, %v536_v54, 0.0  ;;  %vm798_vm1 = vcmask 523264  }
 0x3c2   :  { %v542_v57 = vmul.f32 %v1192_v53, %v1056_v55  ;;  %v506_v58 = vpop.f32.mrb[7].mxu0 }
 0x3c3   :  { %v540_v59 = vmul.f32 %v1194_v56, %v506_v58 }
 0x3c4   :  { %v554_v61 = vsel %vm1338_vm5, %v542_v57, 0.0 }
 0x3c5   :  { %v560_v0 = vadd.f32 %v554_v61, %v552_v60  ;;  %v553_v1 = vsel %vm1312_vm2, %v540_v59, 0.0  ;;  %v1059_v2 = vpop.f32.mrb[8].mxu0  ;;  %v962_v60 = vld [vmem:[%s1532_s5 + $0x2] ss:$0 sm:$0xff] }
 0x3c6   :  { %v559_v4 = vadd.f32 %v553_v1, %v551_v63  ;;  %v546_v6 = vmul.f32 %v1196_v62, %v1059_v2  ;;  %v516_v8 = vpop.f32.mrb[9].mxu0  ;;  %v963_v62 = vld [vmem:[%s1532_s5 + $0x3] ss:$0 sm:$0xff] }
 0x3c7   :  { %v544_v9 = vmul.f32 %v1198_v3, %v516_v8  ;;  %v793_v8 = vld [vmem:[%s1531_s4 + $0x38] sm:$0xff] }
 0x3c8   :  { %v556_v34 = vsel %vm1357_vm7, %v546_v6, 0.0  ;;  %v792_v6 = vld [vmem:[%s1531_s4 + $0x30] sm:$0xff] }
 0x3c9   :  { %v562_v35 = vadd.f32 %v560_v0, %v556_v34  ;;  %v555_v11 = vsel %vm1343_vm6, %v544_v9, 0.0  ;;  %v1062_v15 = vpop.f32.mrb[10].mxu0  ;;  %v1150_v9 = vpack.c.bf16 %v793_v8, %v792_v6  ;;  %v964_v34 = vld [vmem:[%s1532_s5] ss:$0 sm:$0xff] }
 0x3ca   :  { %v561_v14 = vadd.f32 %v559_v4, %v555_v11  ;;  %v550_v17 = vmul.f32 %v1200_v10, %v1062_v15  ;;  %v526_v16 = vpop.f32.mrb[11].mxu0 }
 0x3cb   :  { %v548_v18 = vmul.f32 %v1202_v12, %v526_v16 }
 0x3cc   :  { %v558_v19 = vsel %vm1373_vm9, %v550_v17, 0.0  ;;  %v967_v17 = vld [vmem:[%s1532_s5 + $0x1] ss:$0 sm:$0xff] }
 0x3cd   :  { %v564_v20 = vadd.f32 %v562_v35, %v558_v19  ;;  %v557_v22 = vsel %vm1363_vm8, %v548_v18, 0.0 }
 0x3ce   :  { %v563_v43 = vadd.f32 %v561_v14, %v557_v22 }
 0x3d0   :  { %1071 = vmatprep.mubr.msk.f32.mxu1 %vm30_vm0, %v563_v43 }
 0x3d1   :  { %1072 = vmatmul.mubr.msk.f32.vlgmr.msra.gmra.mrb[6].mxu1 %vm30_vm0, %v564_v20 }
 0x3d2   :  { %1141 = vmatpush3.bf16.msra.mxu1 %v1138_v47 }
 0x3d3   :  { %1143 = vmatprep.subr.bf16.mxu1 %v1142_v50 }
 0x3d6   :  { %1145 = vmatpush3.bf16.msra.mxu1 %v1142_v50 }
 0x3d7   :  { %1147 = vmatprep.subr.bf16.mxu1 %v1146_v52 }
 0x3da   :  { %1149 = vmatpush3.bf16.msra.mxu1 %v1146_v52 }
 0x3db   :  { %1151 = vmatprep.subr.bf16.mxu1 %v1150_v9 }
 0x3de   :  { %1153 = vmatpush3.bf16.msra.mxu1 %v1150_v9 }
 0x4a4   :  { %v1073_v38 = vpop.f32.mrb[6].mxu1 }
 0x4a5   :  { %v641_v23 = vpop.f32.mrb[7].mxu1  ;;  %v653_v25 = vadd.f32 %v1073_v38, %v1297_v7  ;;  %v695_v7 = vld [vmem:[%s1530_s3] sm:$0xff] }
 0x4a6   :  { %v652_v24 = vadd.f32 %v641_v23, %v1290_v5  ;;  %v1130_v39 = vpack.c.bf16 %v696_v37, %v695_v7 }
 0x4a7   :  { %v657_v48 = vsel %vm30_vm0, %v653_v25, 0.0 }
 0x4a8   :  { %v654_v26 = vsel %vm30_vm0, %v652_v24, 0.0  ;;  %1131 = vmatprep.subr.bf16.mxu0 %v1130_v39 }
 0x4a9   :  { %655 = vadd.xlane.f32.xlu0 %v654_v26  ;;  %1133 = vmatpush3.bf16.msra.mxu0 %v1130_v39 }
 0x4aa   :  { %1135 = vmatprep.subr.bf16.mxu0 %v1134_v42 }
 0x4ad   :  { %658 = vadd.xlane.f32.xlu0 %v657_v48  ;;  %1137 = vmatpush3.bf16.msra.mxu0 %v1134_v42 }
 0x536   :  { %v656_v27 = vpop.xlane.xlu0 %655 }
 0x537   :  { %v661_v45 = vmul.f32 0.03125, %v656_v27 }
 0x539   :  { %v663_v28 = vsub.f32 %v652_v24, %v661_v45 }
 0x53a   :  { %v659_v29 = vpop.xlane.xlu0 %658 }
 0x53b   :  { %v662_v30 = vmul.f32 0.03125, %v659_v29  ;;  %v665_v31 = vmul.f32 %v663_v28, %v663_v28 }
 0x53d   :  { %v664_v32 = vsub.f32 %v653_v25, %v662_v30  ;;  %v667_v33 = vsel %vm30_vm0, %v665_v31, 0.0 }
 0x53e   :  { %668 = vadd.xlane.f32.xlu0 %v667_v33 }
 0x53f   :  { %v666_v36 = vmul.f32 %v664_v32, %v664_v32 }
 0x541   :  { %v670_v5 = vsel %vm30_vm0, %v666_v36, 0.0 }
 0x542   :  { %671 = vadd.xlane.f32.xlu0 %v670_v5 }
 0x5cb   :  { %v669_v53 = vpop.xlane.xlu0 %668 }
 0x5cc   :  { %v673_v54 = vmul.f32 0.03125, %v669_v53 }
 0x5ce   :  { %v675_v55 = vadd.f32 1e-05, %v673_v54 }
 0x5cf   :  { %v672_v56 = vpop.xlane.xlu0 %671 }
 0x5d0   :  { %1203 = vrsqrt.f32 %v675_v55  ;;  %v674_v57 = vmul.f32 0.03125, %v672_v56 }
 0x5d2   :  { %v676_v58 = vadd.f32 1e-05, %v674_v57 }
 0x5d4   :  { %1205 = vrsqrt.f32 %v676_v58 }
 0x5da   :  { %v1204_v59 = vpop.eup %1203 }
 0x5db   :  { %v679_v61 = vmul.f32 %v1204_v59, %v663_v28 }
 0x5dd   :  { %v685_v63 = vmul.f32 %v962_v60, %v679_v61 }
 0x5de   :  { %v1206_v0 = vpop.eup %1205 }
 0x5df   :  { %v680_v1 = vmul.f32 %v1206_v0, %v664_v32  ;;  %v691_v2 = vadd.f32 %v963_v62, %v685_v63 }
 0x5e1   :  { %v686_v3 = vmul.f32 %v962_v60, %v680_v1  ;;  %1082 = vmatprep.mubr.msk.f32.mxu0 %vm30_vm0, %v691_v2 }
 0x5e3   :  { %v692_v4 = vadd.f32 %v963_v62, %v686_v3 }
 0x5e5   :  { %1083 = vmatmul.mubr.msk.f32.vlgmr.msra.gmra.mrb[12].mxu0 %vm30_vm0, %v692_v4 }
 0x6b8   :  { %v1084_v10 = vpop.f32.mrb[12].mxu0 }
 0x6b9   :  { %v781_v35 = vadd.f32 %v1084_v10, %v964_v34  ;;  %v775_v11 = vpop.f32.mrb[13].mxu0 }
 0x6ba   :  { %v776_v15 = vadd.f32 %v964_v34, %v775_v11 }
 0x6bb   :  { %v785_v14 = vmax.f32 %v781_v35, 0.0 }
 0x6bc   :  { %v784_v12 = vmax.f32 %v776_v15, 0.0 }
 0x6be   :  { %1101 = vmatprep.mubr.msk.f32.mxu1 %vm798_vm1, %v784_v12 }
 0x6bf   :  { %1102 = vmatmul.mubr.msk.f32.vlgmr.msra.gmra.mrb[8].mxu1 %vm798_vm1, %v785_v14 }
 0x792   :  { %v1103_v16 = vpop.f32.mrb[8].mxu1 }
 0x793   :  { %v877_v18 = vadd.f32 %v1103_v16, %v967_v17  ;;  %v871_v19 = vpop.f32.mrb[9].mxu1 }
 0x794   :  { %v872_v20 = vadd.f32 %v967_v17, %v871_v19 }
 0x795   :  { %v883_v22 = vadd.f32 %v877_v18, %v692_v4 }
 0x796   :  { %v882_v43 = vadd.f32 %v872_v20, %v691_v2 }
 0x797   :  { %v887_v38 = vsel %vm30_vm0, %v883_v22, 0.0 }
 0x798   :  { %888 = vadd.xlane.f32.xlu1 %v887_v38  ;;  %v884_v23 = vsel %vm30_vm0, %v882_v43, 0.0 }
 0x799   :  { %885 = vadd.xlane.f32.xlu0 %v884_v23 }
 0x825   :  { %v889_v24 = vpop.xlane.xlu1 %888 }
 0x826   :  { %v891_v25 = vmul.f32 0.03125, %v889_v24  ;;  %v886_v26 = vpop.xlane.xlu0 %885 }
 0x827   :  { %v890_v48 = vmul.f32 0.03125, %v886_v26 }
 0x828   :  { %v893_v27 = vsub.f32 %v883_v22, %v891_v25 }
 0x829   :  { %v892_v45 = vsub.f32 %v882_v43, %v890_v48 }
 0x82a   :  { %v895_v28 = vmul.f32 %v893_v27, %v893_v27 }
 0x82b   :  { %v894_v29 = vmul.f32 %v892_v45, %v892_v45 }
 0x82c   :  { %v899_v30 = vsel %vm30_vm0, %v895_v28, 0.0 }
 0x82d   :  { %900 = vadd.xlane.f32.xlu1 %v899_v30  ;;  %v896_v31 = vsel %vm30_vm0, %v894_v29, 0.0 }
 0x82e   :  { %897 = vadd.xlane.f32.xlu0 %v896_v31 }
 0x8ba   :  { %v901_v32 = vpop.xlane.xlu1 %900 }
 0x8bb   :  { %v903_v33 = vmul.f32 0.03125, %v901_v32  ;;  %v898_v36 = vpop.xlane.xlu0 %897 }
 0x8bc   :  { %v902_v5 = vmul.f32 0.03125, %v898_v36 }
 0x8bd   :  { %v905_v7 = vadd.f32 1e-05, %v903_v33 }
 0x8be   :  { %v904_v37 = vadd.f32 1e-05, %v902_v5 }
 0x8bf   :  { %1207 = vrsqrt.f32 %v905_v7 }
 0x8c0   :  { %1209 = vrsqrt.f32 %v904_v37 }
 0x8c9   :  { %v1208_v39 = vpop.eup %1207 }
 0x8ca   :  { %v1210_v41 = vpop.eup %1209  ;;  %v909_v42 = vmul.f32 %v1208_v39, %v893_v27 }
 0x8cb   :  { %v908_v13 = vmul.f32 %v1210_v41, %v892_v45 }
 0x8cc   :  { %v915_v46 = vmul.f32 %v970_v40, %v909_v42 }
 0x8cd   :  { %v914_v47 = vmul.f32 %v970_v40, %v908_v13 }
 0x8ce   :  { %v921_v49 = vadd.f32 %v971_v44, %v915_v46 }
 0x8cf   :  { %v920_v50 = vadd.f32 %v971_v44, %v914_v47 }
 0x8d0   :  { %923 = vst.msk [vmem:[#allocation2 + $0x8] sm:$0xff] %vm30_vm0, %v921_v49 }
 0x8d1   :  { %922 = vst.msk [vmem:[#allocation2] sm:$0xff] %vm30_vm0, %v920_v50 }
 0x8d2   :  { %1222 = shalt.err (!%p1219_p4)
}
 0x8d3   :  { %s1223_s27 = scalar_lea.hbm %s1533_s6, 256 }
 0x8d4   :  { %p1224_p5 = scmp.ne.s32.totalorder %s1533_s6, %s1223_s27  ;;  %p1227_p6 = scmp.lt.u32.totalorder %s1223_s27, %s1533_s6 }
 0x8d6   :  { %p1229_p7 = pnand %p1227_p6, %p1224_p5 }
 0x8d8   :  { %1232 = shalt.err (!%p1229_p7)
}
 0x8d9   :  { %s1238_s3 = smov 128   ;;  %s1239_s8 = smov 8  }
 0x8da   :  { %935 = dma.vmem_to_hbm [thread:$0]  %s930_s24, 256, %s1533_s6, [#allocation3], %s1238_s3, %s1238_s3, %s1239_s8  }
 0x8db   :  { %1233 = dma.done.wait [#allocation3], 256  }
 0x8dc   :  { %1234 = vsyncadd [#allocation3], 4294967040 }
 0x8dd   :  { %939 = vsyncpa [#allocation3], 1 }

</bundles_post_ra>
